<compile_context>
chip_gen: v6e
topology: v6e:2x2x1
jax: 0.10.0
libtpu: 0.0.40
codegen_flags: <defaults>
</compile_context>

<pallas_src>
import functools

import jax
import jax.numpy as jnp
from jax.experimental import pallas as pl
from jax.experimental.pallas import tpu as pltpu


# ----------------------------------------------------------------------------
# Pallas kernel: tiled matmul + bias + optional ReLU, f32 accumulator scratch
# ----------------------------------------------------------------------------
def _matmul_bias_kernel(x_ref, w_ref, b_ref, o_ref, acc_ref, *, relu):
    k = pl.program_id(2)

    @pl.when(k == 0)
    def _init():
        acc_ref[...] = jnp.zeros_like(acc_ref)

    acc_ref[...] += jnp.dot(
        x_ref[...], w_ref[...], preferred_element_type=jnp.float32
    )

    @pl.when(k == pl.num_programs(2) - 1)
    def _finalize():
        out = acc_ref[...] + b_ref[...]          # (1, tn) broadcasts over rows
        if relu:
            out = jnp.maximum(out, 0.0)
        o_ref[...] = out.astype(o_ref.dtype)


def _round_up(v, m):
    return (v + m - 1) // m * m


def matmul_bias(x, w, b, *, relu=False, out_dtype=jnp.float32,
                tm=256, tn=256, tk=512):
    """y = act(x @ w + b).  x:(M,K), w:(K,N), b:(N,) -> (M,N) in out_dtype.

    Inputs are zero-padded to aligned shapes, cast to bf16 for the MXU, and the
    result is accumulated in f32.  Padded rows/columns are sliced off.
    """
    M, K = x.shape
    K2, N = w.shape
    assert K == K2 and b.shape == (N,)

    # ---- padded shapes & tiles ---------------------------------------------
    Np = _round_up(N, 128)               # lane-dense output columns
    tn = min(tn, Np)
    Np = _round_up(Np, tn)
    Mp = _round_up(M, 8)                 # sublane-aligned rows
    tm = min(tm, Mp)
    Mp = _round_up(Mp, tm)
    if K <= tk:                          # single full-K step (block == full K)
        Kp = _round_up(K, 8)
        tk = Kp
    else:                                # K reduction grid
        Kp = _round_up(K, tk)

    xb = jnp.pad(x, ((0, Mp - M), (0, Kp - K))).astype(jnp.bfloat16)
    wb = jnp.pad(w, ((0, Kp - K), (0, Np - N))).astype(jnp.bfloat16)
    bb = jnp.pad(b, (0, Np - N)).astype(jnp.float32).reshape(1, Np)

    grid = (Mp // tm, Np // tn, Kp // tk)

    out = pl.pallas_call(
        functools.partial(_matmul_bias_kernel, relu=relu),
        out_shape=jax.ShapeDtypeStruct((Mp, Np), out_dtype),
        grid_spec=pltpu.PrefetchScalarGridSpec(
            num_scalar_prefetch=0,
            grid=grid,
            in_specs=[
                pl.BlockSpec((tm, tk), lambda i, j, k: (i, k)),
                pl.BlockSpec((tk, tn), lambda i, j, k: (k, j)),
                pl.BlockSpec((1, tn), lambda i, j, k: (0, j)),
            ],
            out_specs=pl.BlockSpec((tm, tn), lambda i, j, k: (i, j)),
            scratch_shapes=[pltpu.VMEM((tm, tn), jnp.float32)],
        ),
        compiler_params=pltpu.CompilerParams(
            dimension_semantics=("parallel", "parallel", "arbitrary")),
    )(xb, wb, bb)
    return out[:M, :N]


# ----------------------------------------------------------------------------
# NHWC glue: im2col for 3x3 / stride-2 / pad-1 conv (no transposes)
# ----------------------------------------------------------------------------
def im2col_nhwc(x, k=3, stride=2, pad=1):
    """x: (N, H, W, C) -> patches (N*Ho*Wo, k*k*C) ordered (kh, kw, c)."""
    n, h, w, c = x.shape
    xp = jnp.pad(x, ((0, 0), (pad, pad), (pad, pad), (0, 0)))
    ho = (h + 2 * pad - k) // stride + 1
    wo = (w + 2 * pad - k) // stride + 1
    cols = []
    for kh in range(k):
        for kw in range(k):
            cols.append(
                xp[:, kh:kh + stride * ho:stride, kw:kw + stride * wo:stride, :]
            )
    patches = jnp.concatenate(cols, axis=-1)          # (N, Ho, Wo, 9*C)
    return patches.reshape(n * ho * wo, k * k * c), ho, wo


def conv3x3_s2_nhwc(x, w_mat, b):
    """Conv2d(k=3, s=2, p=1) + ReLU in NHWC.

    x: (N, H, W, Cin); w_mat: (9*Cin, Cout) with rows ordered (kh, kw, cin);
    b: (Cout,).  Returns (N, Ho, Wo, Cout) in bf16.
    """
    n = x.shape[0]
    cout = w_mat.shape[1]
    patches, ho, wo = im2col_nhwc(x)
    out = matmul_bias(patches, w_mat, b, relu=True, out_dtype=jnp.bfloat16)
    return out.reshape(n, ho, wo, cout)


# ----------------------------------------------------------------------------
# Encoder forward (NCHW in, NHWC internally, heads fused into one matmul)
# ----------------------------------------------------------------------------
def encoder_forward(x, params, *, latent_dims, pose_dims):
    """x: (N, 1, H, W) float32 -> (mu, log_var, pose)."""
    # NCHW -> NHWC once at the boundary (C == 1, so this is a free reshape).
    h = jnp.transpose(x, (0, 2, 3, 1))
    for (w_mat, b) in params["conv_mats"]:
        h = conv3x3_s2_nhwc(h, w_mat, b)
    n = h.shape[0]
    encoded = h.reshape(n, -1)                        # NHWC flatten (bf16)
    heads = matmul_bias(encoded, params["w_heads"], params["b_heads"],
                        relu=False, out_dtype=jnp.float32)
    ld, pd = latent_dims, pose_dims
    mu = heads[:, :ld]
    log_var = heads[:, ld:2 * ld]
    pose = heads[:, 2 * ld:2 * ld + pd]
    return mu, log_var, pose


# ----------------------------------------------------------------------------
# Parameters: torch-convention init + one-time conversion to kernel layout
# ----------------------------------------------------------------------------
def init_params(key, filters, latent_dims, pose_dims, flat_shape):
    """Random params in the PyTorch convention (OIHW convs, (out,in) linears)."""
    tp = {"convs": []}
    cin = 1
    for f in filters:
        key, kw_, kb_ = jax.random.split(key, 3)
        scale = (cin * 9) ** -0.5
        wc = jax.random.normal(kw_, (f, cin, 3, 3), jnp.float32) * scale
        bc = jax.random.normal(kb_, (f,), jnp.float32) * 0.01
        tp["convs"].append((wc, bc))
        cin = f
    key, kmu, klv, kpo, kb1, kb2, kb3 = jax.random.split(key, 7)
    scale = flat_shape ** -0.5
    tp["w_mu"] = jax.random.normal(kmu, (latent_dims, flat_shape), jnp.float32) * scale
    tp["w_lv"] = jax.random.normal(klv, (latent_dims, flat_shape), jnp.float32) * scale
    tp["w_po"] = jax.random.normal(kpo, (pose_dims, flat_shape), jnp.float32) * scale
    tp["b_mu"] = jax.random.normal(kb1, (latent_dims,), jnp.float32) * 0.01
    tp["b_lv"] = jax.random.normal(kb2, (latent_dims,), jnp.float32) * 0.01
    tp["b_po"] = jax.random.normal(kb3, (pose_dims,), jnp.float32) * 0.01
    return tp


def prepare_params(tp, feat_shape):
    """One-time conversion: OIHW convs -> (9*Cin, Cout) mats with (kh,kw,cin)
    row order, and head-weight rows permuted from NCHW-flatten order to the
    NHWC-flatten order used internally (mathematically identical)."""
    conv_mats = []
    for (wc, bc) in tp["convs"]:
        cout, cin, kh, kw = wc.shape
        w_mat = wc.transpose(2, 3, 1, 0).reshape(kh * kw * cin, cout)
        conv_mats.append((w_mat, bc))

    c, hf, wf = feat_shape

    def to_nhwc_rows(w_t):                 # (out, flat_nchw) -> (flat_nhwc, out)
        out = w_t.shape[0]
        return (w_t.T.reshape(c, hf, wf, out)
                     .transpose(1, 2, 0, 3)
                     .reshape(hf * wf * c, out))

    w_heads = jnp.concatenate(
        [to_nhwc_rows(tp["w_mu"]), to_nhwc_rows(tp["w_lv"]),
         to_nhwc_rows(tp["w_po"])], axis=1)
    b_heads = jnp.concatenate([tp["b_mu"], tp["b_lv"], tp["b_po"]])
    return {"conv_mats": conv_mats, "w_heads": w_heads, "b_heads": b_heads}


# ----------------------------------------------------------------------------
# Pure-JAX (XLA, f32) reference of the PyTorch module, for a correctness check
# ----------------------------------------------------------------------------
def encoder_reference(x, tp, latent_dims, pose_dims):
    h = x
    for (wc, bc) in tp["convs"]:
        h = jax.lax.conv_general_dilated(
            h, wc, window_strides=(2, 2), padding=((1, 1), (1, 1)),
            dimension_numbers=("NCHW", "OIHW", "NCHW"))
        h = jax.nn.relu(h + bc.reshape(1, -1, 1, 1))
    enc = h.reshape(h.shape[0], -1)                   # NCHW flatten
    mu = enc @ tp["w_mu"].T + tp["b_mu"]
    lv = enc @ tp["w_lv"].T + tp["b_lv"]
    po = enc @ tp["w_po"].T + tp["b_po"]
    return mu, lv, po


if __name__ == "__main__":
    # Small config consistent with the module:
    #   depth=2, filters=[8, 16], latent_dims=8, pose_dims=3, Conv2d
    #   input (N=2, CH=1, 16, 16) -> (2,8,8,8) -> (2,16,4,4); flat = 256
    filters = [8, 16]
    latent_dims = 8
    pose_dims = 3
    N, H, W = 2, 16, 16
    hf, wf = H // 4, W // 4
    flat_shape = filters[-1] * hf * wf

    key = jax.random.PRNGKey(0)
    key, kx = jax.random.split(key)
    x = jax.random.normal(kx, (N, 1, H, W), jnp.float32)

    torch_params = init_params(key, filters, latent_dims, pose_dims, flat_shape)
    params = prepare_params(torch_params, (filters[-1], hf, wf))

    fwd = jax.jit(functools.partial(encoder_forward,
                                    latent_dims=latent_dims,
                                    pose_dims=pose_dims))
    mu, log_var, pose = fwd(x, params)
    jax.block_until_ready((mu, log_var, pose))

    assert mu.shape == (N, latent_dims)
    assert log_var.shape == (N, latent_dims)
    assert pose.shape == (N, pose_dims)

    # Numerical check against the f32 XLA reference (tolerance covers bf16
    # MXU inputs; any layout/permutation bug would produce O(1) errors).
    ref = encoder_reference(x, torch_params, latent_dims, pose_dims)
    for got, want in zip((mu, log_var, pose), ref):
        err = float(jnp.max(jnp.abs(got - want)))
        assert err < 0.15, f"mismatch vs reference: max abs err = {err}"

    print("KERNEL_OK")
</pallas_src>

<mosaic_0001>
module attributes {stable_mosaic.version = 11 : i64} {
  func.func @_matmul_bias_kernel(%arg0: i32, %arg1: i32, %arg2: i32, %arg3: memref<128x16xbf16, #tpu.memory_space<vmem>>, %arg4: memref<16x128xbf16, #tpu.memory_space<vmem>>, %arg5: memref<1x128xf32, #tpu.memory_space<vmem>>, %arg6: memref<128x128xbf16, #tpu.memory_space<vmem>>, %arg7: memref<128x128xf32, #tpu.memory_space<vmem>>) attributes {dimension_semantics = [#tpu.dimension_semantics<parallel>, #tpu.dimension_semantics<parallel>, #tpu.dimension_semantics<arbitrary>], iteration_bounds = array<i64: 1, 1, 1>, scalar_prefetch = 0 : i64, scratch_operands = 1 : i64, tpu.core_type = #tpu.core_type<tc>, window_params = [{transform_indices = @transform_0, window_bounds = array<i64: 128, 16>}, {transform_indices = @transform_1, window_bounds = array<i64: 16, 128>}, {transform_indices = @transform_2, window_bounds = array<i64: 1, 128>}, {transform_indices = @transform_3, window_bounds = array<i64: 128, 128>}]} {
    %c0_i32 = arith.constant 0 : i32
    %0 = arith.cmpi eq, %arg2, %c0_i32 : i32
    %1 = arith.extui %0 : i1 to i32
    %c0_i32_0 = arith.constant 0 : i32
    %2 = arith.cmpi ne, %1, %c0_i32_0 : i32
    scf.if %2 {
      %cst_10 = arith.constant 0.000000e+00 : f32
      %12 = vector.broadcast %cst_10 : f32 to vector<128x128xf32>
      %c0_11 = arith.constant 0 : index
      %c0_12 = arith.constant 0 : index
      %13 = vector.load %arg7[%c0_11, %c0_12] : memref<128x128xf32, #tpu.memory_space<vmem>>, vector<128x128xf32>
      tpu.vector_store %arg7[%c0_11, %c0_12], %12 {strides = array<i32>} : memref<128x128xf32, #tpu.memory_space<vmem>>, vector<128x128xf32>,
    } else {
    }
    %c0 = arith.constant 0 : index
    %c0_1 = arith.constant 0 : index
    %3 = vector.load %arg7[%c0, %c0_1] : memref<128x128xf32, #tpu.memory_space<vmem>>, vector<128x128xf32>
    %c0_2 = arith.constant 0 : index
    %c0_3 = arith.constant 0 : index
    %4 = vector.load %arg3[%c0_2, %c0_3] : memref<128x16xbf16, #tpu.memory_space<vmem>>, vector<128x16xbf16>
    %c0_4 = arith.constant 0 : index
    %c0_5 = arith.constant 0 : index
    %5 = vector.load %arg4[%c0_4, %c0_5] : memref<16x128xbf16, #tpu.memory_space<vmem>>, vector<16x128xbf16>
    %cst = arith.constant dense<0.000000e+00> : vector<128x128xf32>
    %6 = tpu.matmul %4, %5, %cst {dimension_numbers = #tpu.dot_dimension_numbers<[1], [0], [0], [1], [0, 0, 1, 1], [], []>} : vector<128x16xbf16>, vector<16x128xbf16>, vector<128x128xf32> -> vector<128x128xf32>
    %7 = arith.addf %3, %6 : vector<128x128xf32>
    %c0_6 = arith.constant 0 : index
    %c0_7 = arith.constant 0 : index
    %8 = vector.load %arg7[%c0_6, %c0_7] : memref<128x128xf32, #tpu.memory_space<vmem>>, vector<128x128xf32>
    tpu.vector_store %arg7[%c0_6, %c0_7], %7 {strides = array<i32>} : memref<128x128xf32, #tpu.memory_space<vmem>>, vector<128x128xf32>,
    %c0_i32_8 = arith.constant 0 : i32
    %9 = arith.cmpi eq, %arg2, %c0_i32_8 : i32
    %10 = arith.extui %9 : i1 to i32
    %c0_i32_9 = arith.constant 0 : i32
    %11 = arith.cmpi ne, %10, %c0_i32_9 : i32
    scf.if %11 {
      %c0_10 = arith.constant 0 : index
      %c0_11 = arith.constant 0 : index
      %12 = vector.load %arg7[%c0_10, %c0_11] : memref<128x128xf32, #tpu.memory_space<vmem>>, vector<128x128xf32>
      %c0_12 = arith.constant 0 : index
      %c0_13 = arith.constant 0 : index
      %13 = vector.load %arg5[%c0_12, %c0_13] : memref<1x128xf32, #tpu.memory_space<vmem>>, vector<1x128xf32>
      %14 = vector.broadcast %13 : vector<1x128xf32> to vector<128x128xf32>
      %15 = arith.addf %12, %14 : vector<128x128xf32>
      %cst_14 = arith.constant 0.000000e+00 : f32
      %16 = vector.broadcast %cst_14 : f32 to vector<128x128xf32>
      %17 = arith.maximumf %15, %16 : vector<128x128xf32>
      %18 = arith.truncf %17 : vector<128x128xf32> to vector<128x128xbf16>
      %c0_15 = arith.constant 0 : index
      %c0_16 = arith.constant 0 : index
      %19 = vector.load %arg6[%c0_15, %c0_16] : memref<128x128xbf16, #tpu.memory_space<vmem>>, vector<128x128xbf16>
      tpu.vector_store %arg6[%c0_15, %c0_16], %18 {strides = array<i32>} : memref<128x128xbf16, #tpu.memory_space<vmem>>, vector<128x128xbf16>,
    } else {
    }
    return
  }
  func.func @transform_0(%arg0: i32, %arg1: i32, %arg2: i32) -> (i32, i32) {
    %c0_i32 = arith.constant 0 : i32
    return %arg0, %arg2 : i32, i32
  }
  func.func @transform_1(%arg0: i32, %arg1: i32, %arg2: i32) -> (i32, i32) {
    %c0_i32 = arith.constant 0 : i32
    return %arg2, %arg1 : i32, i32
  }
  func.func @transform_2(%arg0: i32, %arg1: i32, %arg2: i32) -> (i32, i32) {
    %c0_i32 = arith.constant 0 : i32
    %c0_i32_0 = arith.constant 0 : i32
    return %c0_i32, %arg1 : i32, i32
  }
  func.func @transform_3(%arg0: i32, %arg1: i32, %arg2: i32) -> (i32, i32) {
    %c0_i32 = arith.constant 0 : i32
    return %arg0, %arg1 : i32, i32
  }
}

module attributes {stable_mosaic.version = 11 : i64} {
  func.func @_matmul_bias_kernel(%arg0: i32, %arg1: i32, %arg2: i32, %arg3: memref<32x72xbf16, #tpu.memory_space<vmem>>, %arg4: memref<72x128xbf16, #tpu.memory_space<vmem>>, %arg5: memref<1x128xf32, #tpu.memory_space<vmem>>, %arg6: memref<32x128xbf16, #tpu.memory_space<vmem>>, %arg7: memref<32x128xf32, #tpu.memory_space<vmem>>) attributes {dimension_semantics = [#tpu.dimension_semantics<parallel>, #tpu.dimension_semantics<parallel>, #tpu.dimension_semantics<arbitrary>], iteration_bounds = array<i64: 1, 1, 1>, scalar_prefetch = 0 : i64, scratch_operands = 1 : i64, tpu.core_type = #tpu.core_type<tc>, window_params = [{transform_indices = @transform_0, window_bounds = array<i64: 32, 72>}, {transform_indices = @transform_1, window_bounds = array<i64: 72, 128>}, {transform_indices = @transform_2, window_bounds = array<i64: 1, 128>}, {transform_indices = @transform_3, window_bounds = array<i64: 32, 128>}]} {
    %c0_i32 = arith.constant 0 : i32
    %0 = arith.cmpi eq, %arg2, %c0_i32 : i32
    %1 = arith.extui %0 : i1 to i32
    %c0_i32_0 = arith.constant 0 : i32
    %2 = arith.cmpi ne, %1, %c0_i32_0 : i32
    scf.if %2 {
      %cst_10 = arith.constant 0.000000e+00 : f32
      %12 = vector.broadcast %cst_10 : f32 to vector<32x128xf32>
      %c0_11 = arith.constant 0 : index
      %c0_12 = arith.constant 0 : index
      %13 = vector.load %arg7[%c0_11, %c0_12] : memref<32x128xf32, #tpu.memory_space<vmem>>, vector<32x128xf32>
      tpu.vector_store %arg7[%c0_11, %c0_12], %12 {strides = array<i32>} : memref<32x128xf32, #tpu.memory_space<vmem>>, vector<32x128xf32>,
    } else {
    }
    %c0 = arith.constant 0 : index
    %c0_1 = arith.constant 0 : index
    %3 = vector.load %arg7[%c0, %c0_1] : memref<32x128xf32, #tpu.memory_space<vmem>>, vector<32x128xf32>
    %c0_2 = arith.constant 0 : index
    %c0_3 = arith.constant 0 : index
    %4 = vector.load %arg3[%c0_2, %c0_3] : memref<32x72xbf16, #tpu.memory_space<vmem>>, vector<32x72xbf16>
    %c0_4 = arith.constant 0 : index
    %c0_5 = arith.constant 0 : index
    %5 = vector.load %arg4[%c0_4, %c0_5] : memref<72x128xbf16, #tpu.memory_space<vmem>>, vector<72x128xbf16>
    %cst = arith.constant dense<0.000000e+00> : vector<32x128xf32>
    %6 = tpu.matmul %4, %5, %cst {dimension_numbers = #tpu.dot_dimension_numbers<[1], [0], [0], [1], [0, 0, 1, 1], [], []>} : vector<32x72xbf16>, vector<72x128xbf16>, vector<32x128xf32> -> vector<32x128xf32>
    %7 = arith.addf %3, %6 : vector<32x128xf32>
    %c0_6 = arith.constant 0 : index
    %c0_7 = arith.constant 0 : index
    %8 = vector.load %arg7[%c0_6, %c0_7] : memref<32x128xf32, #tpu.memory_space<vmem>>, vector<32x128xf32>
    tpu.vector_store %arg7[%c0_6, %c0_7], %7 {strides = array<i32>} : memref<32x128xf32, #tpu.memory_space<vmem>>, vector<32x128xf32>,
    %c0_i32_8 = arith.constant 0 : i32
    %9 = arith.cmpi eq, %arg2, %c0_i32_8 : i32
    %10 = arith.extui %9 : i1 to i32
    %c0_i32_9 = arith.constant 0 : i32
    %11 = arith.cmpi ne, %10, %c0_i32_9 : i32
    scf.if %11 {
      %c0_10 = arith.constant 0 : index
      %c0_11 = arith.constant 0 : index
      %12 = vector.load %arg7[%c0_10, %c0_11] : memref<32x128xf32, #tpu.memory_space<vmem>>, vector<32x128xf32>
      %c0_12 = arith.constant 0 : index
      %c0_13 = arith.constant 0 : index
      %13 = vector.load %arg5[%c0_12, %c0_13] : memref<1x128xf32, #tpu.memory_space<vmem>>, vector<1x128xf32>
      %14 = vector.broadcast %13 : vector<1x128xf32> to vector<32x128xf32>
      %15 = arith.addf %12, %14 : vector<32x128xf32>
      %cst_14 = arith.constant 0.000000e+00 : f32
      %16 = vector.broadcast %cst_14 : f32 to vector<32x128xf32>
      %17 = arith.maximumf %15, %16 : vector<32x128xf32>
      %18 = arith.truncf %17 : vector<32x128xf32> to vector<32x128xbf16>
      %c0_15 = arith.constant 0 : index
      %c0_16 = arith.constant 0 : index
      %19 = vector.load %arg6[%c0_15, %c0_16] : memref<32x128xbf16, #tpu.memory_space<vmem>>, vector<32x128xbf16>
      tpu.vector_store %arg6[%c0_15, %c0_16], %18 {strides = array<i32>} : memref<32x128xbf16, #tpu.memory_space<vmem>>, vector<32x128xbf16>,
    } else {
    }
    return
  }
  func.func @transform_0(%arg0: i32, %arg1: i32, %arg2: i32) -> (i32, i32) {
    %c0_i32 = arith.constant 0 : i32
    return %arg0, %arg2 : i32, i32
  }
  func.func @transform_1(%arg0: i32, %arg1: i32, %arg2: i32) -> (i32, i32) {
    %c0_i32 = arith.constant 0 : i32
    return %arg2, %arg1 : i32, i32
  }
  func.func @transform_2(%arg0: i32, %arg1: i32, %arg2: i32) -> (i32, i32) {
    %c0_i32 = arith.constant 0 : i32
    %c0_i32_0 = arith.constant 0 : i32
    return %c0_i32, %arg1 : i32, i32
  }
  func.func @transform_3(%arg0: i32, %arg1: i32, %arg2: i32) -> (i32, i32) {
    %c0_i32 = arith.constant 0 : i32
    return %arg0, %arg1 : i32, i32
  }
}

module attributes {stable_mosaic.version = 11 : i64} {
  func.func @_matmul_bias_kernel(%arg0: i32, %arg1: i32, %arg2: i32, %arg3: memref<8x256xbf16, #tpu.memory_space<vmem>>, %arg4: memref<256x128xbf16, #tpu.memory_space<vmem>>, %arg5: memref<1x128xf32, #tpu.memory_space<vmem>>, %arg6: memref<8x128xf32, #tpu.memory_space<vmem>>, %arg7: memref<8x128xf32, #tpu.memory_space<vmem>>) attributes {dimension_semantics = [#tpu.dimension_semantics<parallel>, #tpu.dimension_semantics<parallel>, #tpu.dimension_semantics<arbitrary>], iteration_bounds = array<i64: 1, 1, 1>, scalar_prefetch = 0 : i64, scratch_operands = 1 : i64, tpu.core_type = #tpu.core_type<tc>, window_params = [{transform_indices = @transform_0, window_bounds = array<i64: 8, 256>}, {transform_indices = @transform_1, window_bounds = array<i64: 256, 128>}, {transform_indices = @transform_2, window_bounds = array<i64: 1, 128>}, {transform_indices = @transform_3, window_bounds = array<i64: 8, 128>}]} {
    %c0_i32 = arith.constant 0 : i32
    %0 = arith.cmpi eq, %arg2, %c0_i32 : i32
    %1 = arith.extui %0 : i1 to i32
    %c0_i32_0 = arith.constant 0 : i32
    %2 = arith.cmpi ne, %1, %c0_i32_0 : i32
    scf.if %2 {
      %cst_10 = arith.constant 0.000000e+00 : f32
      %12 = vector.broadcast %cst_10 : f32 to vector<8x128xf32>
      %c0_11 = arith.constant 0 : index
      %c0_12 = arith.constant 0 : index
      %13 = vector.load %arg7[%c0_11, %c0_12] : memref<8x128xf32, #tpu.memory_space<vmem>>, vector<8x128xf32>
      tpu.vector_store %arg7[%c0_11, %c0_12], %12 {strides = array<i32>} : memref<8x128xf32, #tpu.memory_space<vmem>>, vector<8x128xf32>,
    } else {
    }
    %c0 = arith.constant 0 : index
    %c0_1 = arith.constant 0 : index
    %3 = vector.load %arg7[%c0, %c0_1] : memref<8x128xf32, #tpu.memory_space<vmem>>, vector<8x128xf32>
    %c0_2 = arith.constant 0 : index
    %c0_3 = arith.constant 0 : index
    %4 = vector.load %arg3[%c0_2, %c0_3] : memref<8x256xbf16, #tpu.memory_space<vmem>>, vector<8x256xbf16>
    %c0_4 = arith.constant 0 : index
    %c0_5 = arith.constant 0 : index
    %5 = vector.load %arg4[%c0_4, %c0_5] : memref<256x128xbf16, #tpu.memory_space<vmem>>, vector<256x128xbf16>
    %cst = arith.constant dense<0.000000e+00> : vector<8x128xf32>
    %6 = tpu.matmul %4, %5, %cst {dimension_numbers = #tpu.dot_dimension_numbers<[1], [0], [0], [1], [0, 0, 1, 1], [], []>} : vector<8x256xbf16>, vector<256x128xbf16>, vector<8x128xf32> -> vector<8x128xf32>
    %7 = arith.addf %3, %6 : vector<8x128xf32>
    %c0_6 = arith.constant 0 : index
    %c0_7 = arith.constant 0 : index
    %8 = vector.load %arg7[%c0_6, %c0_7] : memref<8x128xf32, #tpu.memory_space<vmem>>, vector<8x128xf32>
    tpu.vector_store %arg7[%c0_6, %c0_7], %7 {strides = array<i32>} : memref<8x128xf32, #tpu.memory_space<vmem>>, vector<8x128xf32>,
    %c0_i32_8 = arith.constant 0 : i32
    %9 = arith.cmpi eq, %arg2, %c0_i32_8 : i32
    %10 = arith.extui %9 : i1 to i32
    %c0_i32_9 = arith.constant 0 : i32
    %11 = arith.cmpi ne, %10, %c0_i32_9 : i32
    scf.if %11 {
      %c0_10 = arith.constant 0 : index
      %c0_11 = arith.constant 0 : index
      %12 = vector.load %arg7[%c0_10, %c0_11] : memref<8x128xf32, #tpu.memory_space<vmem>>, vector<8x128xf32>
      %c0_12 = arith.constant 0 : index
      %c0_13 = arith.constant 0 : index
      %13 = vector.load %arg5[%c0_12, %c0_13] : memref<1x128xf32, #tpu.memory_space<vmem>>, vector<1x128xf32>
      %14 = vector.broadcast %13 : vector<1x128xf32> to vector<8x128xf32>
      %15 = arith.addf %12, %14 : vector<8x128xf32>
      %c0_14 = arith.constant 0 : index
      %c0_15 = arith.constant 0 : index
      %16 = vector.load %arg6[%c0_14, %c0_15] : memref<8x128xf32, #tpu.memory_space<vmem>>, vector<8x128xf32>
      tpu.vector_store %arg6[%c0_14, %c0_15], %15 {strides = array<i32>} : memref<8x128xf32, #tpu.memory_space<vmem>>, vector<8x128xf32>,
    } else {
    }
    return
  }
  func.func @transform_0(%arg0: i32, %arg1: i32, %arg2: i32) -> (i32, i32) {
    %c0_i32 = arith.constant 0 : i32
    return %arg0, %arg2 : i32, i32
  }
  func.func @transform_1(%arg0: i32, %arg1: i32, %arg2: i32) -> (i32, i32) {
    %c0_i32 = arith.constant 0 : i32
    return %arg2, %arg1 : i32, i32
  }
  func.func @transform_2(%arg0: i32, %arg1: i32, %arg2: i32) -> (i32, i32) {
    %c0_i32 = arith.constant 0 : i32
    %c0_i32_0 = arith.constant 0 : i32
    return %c0_i32, %arg1 : i32, i32
  }
  func.func @transform_3(%arg0: i32, %arg1: i32, %arg2: i32) -> (i32, i32) {
    %c0_i32 = arith.constant 0 : i32
    return %arg0, %arg1 : i32, i32
  }
}

</mosaic_0001>

<bundles_post_ra>
// kernel: encoder_forward.3
= control target key start
LH: loop header
LB: loop body
LE: loop exit
PB: predicated region body
PF: predicated region fallthrough
CT: control target
= control target key end

     0   :  { %vm115_vm0 = vcmask 130048   ;;  %s628_s1 = inlined_call_operand.vmem [shape: bf16[16,128], index: 1, kind: input, shape index: {}]   ;;  %s629_s0 = inlined_call_operand.vmem [shape: bf16[128,16], index: 0, kind: input, shape index: {}]   ;;  %s630_s2 = inlined_call_operand.vmem [shape: f32[1,128], index: 2, kind: input, shape index: {}]   ;;  %s631_s3 = inlined_call_operand.vmem [shape: bf16[128,128], index: 3, kind: output, shape index: {}]  }
   0x1   :  { %v537_v0 = vld [vmem:[%s628_s1] sm:$0xff]   ;;  %v540_v3 = vld [vmem:[%s629_s0 + $0x8] sm:$0xff]   ;;  %v542_v5 = vld [vmem:[%s629_s0 + $0x10] sm:$0xff]  }
   0x2   :  { %v538_v1 = vld [vmem:[%s629_s0] sm:$0xff]   ;;  %517 = vmatprep.subr.bf16.mxu0 %v537_v0  ;;  %535 = vmatprep.subr.bf16.mxu1 %v537_v0  ;;  %v541_v4 = vld [vmem:[%s629_s0 + $0x28] sm:$0xff]   ;;  %v543_v6 = vld [vmem:[%s629_s0 + $0x30] sm:$0xff]  }
   0x3   :  { %v539_v2 = vld [vmem:[%s629_s0 + $0x20] sm:$0xff]   ;;  %518 = vmatpush3.bf16.msra.mxu0 %v537_v0  ;;  %536 = vmatpush3.bf16.msra.mxu1 %v537_v0  ;;  %v544_v7 = vld [vmem:[%s629_s0 + $0x18] sm:$0xff]  }
   0x4   :  { %519 = vmatprep.mubr.msk.bf16.mxu0 %vm115_vm0, %v538_v1  ;;  %527 = vmatprep.mubr.msk.bf16.mxu1 %vm115_vm0, %v539_v2  ;;  %v545_v8 = vld [vmem:[%s629_s0 + $0x38] sm:$0xff]   ;;  %v428_v9 = vld [vmem:[%s630_s2] ss:$0 sm:$0xff] }
   0x6   :  { %520 = vmatmul.mubr.msk.bf16.vlgmr.msra.gmra.mxu0 %vm115_vm0, %v540_v3  ;;  %528 = vmatmul.mubr.msk.bf16.vlgmr.msra.gmra.mxu1 %vm115_vm0, %v541_v4 }
   0x7   :  { %523 = vmatprep.mubr.msk.bf16.mxu0 %vm115_vm0, %v542_v5  ;;  %531 = vmatprep.mubr.msk.bf16.mxu1 %vm115_vm0, %v543_v6 }
   0xe   :  { %524 = vmatmul.mubr.msk.bf16.gmra.mxu0 %vm115_vm0, %v544_v7  ;;  %532 = vmatmul.mubr.msk.bf16.gmra.mxu1 %vm115_vm0, %v545_v8 }
  0xc6   :  { %v521_v10 = vpop.f32.mrf.mxu0  ;;  %v529_v11 = vpop.f32.mrf.mxu1 }
  0xc7   :  { %v297_v12 = vadd.f32 %v521_v10, %v428_v9  ;;  %v305_v13 = vadd.f32 %v529_v11, %v428_v9 }
  0xc8   :  { %v174_v14 = vpop.f32.mrf.mxu0  ;;  %v206_v15 = vpop.f32.mrf.mxu1 }
  0xc9   :  { %v295_v16 = vadd.f32 %v428_v9, %v174_v14  ;;  %v303_v17 = vadd.f32 %v428_v9, %v206_v15  ;;  %v313_v22 = vmax.f32 %v297_v12, 0.0  ;;  %v321_v23 = vmax.f32 %v305_v13, 0.0 }
  0xca   :  { %v522_v18 = vpop.f32.mrf.mxu0  ;;  %v530_v19 = vpop.f32.mrf.mxu1 }
  0xcb   :  { %v298_v20 = vadd.f32 %v522_v18, %v428_v9  ;;  %v306_v21 = vadd.f32 %v530_v19, %v428_v9  ;;  %v311_v30 = vmax.f32 %v295_v16, 0.0  ;;  %v319_v31 = vmax.f32 %v303_v17, 0.0 }
  0xcc   :  { %v177_v24 = vpop.f32.mrf.mxu0  ;;  %v209_v25 = vpop.f32.mrf.mxu1 }
  0xcd   :  { %v314_v26 = vmax.f32 %v298_v20, 0.0  ;;  %v322_v27 = vmax.f32 %v306_v21, 0.0  ;;  %v296_v28 = vadd.f32 %v428_v9, %v177_v24  ;;  %v304_v29 = vadd.f32 %v428_v9, %v209_v25 }
  0xce   :  { %v525_v32 = vpop.f32.mrf.mxu0  ;;  %v533_v33 = vpop.f32.mrf.mxu1 }
  0xcf   :  { %v469_v34 = vpack.c.bf16 %v314_v26, %v313_v22  ;;  %v489_v35 = vpack.c.bf16 %v322_v27, %v321_v23  ;;  %v312_v36 = vmax.f32 %v296_v28, 0.0  ;;  %v320_v37 = vmax.f32 %v304_v29, 0.0 }
  0xd0   :  { %v301_v38 = vadd.f32 %v525_v32, %v428_v9  ;;  %v309_v39 = vadd.f32 %v533_v33, %v428_v9  ;;  %v190_v40 = vpop.f32.mrf.mxu0  ;;  %v222_v41 = vpop.f32.mrf.mxu1 }
  0xd1   :  { %501 = vst [vmem:[%s631_s3 + $0x8] sm:$0xff] %v469_v34   ;;  %505 = vst [vmem:[%s631_s3 + $0x28] sm:$0xff] %v489_v35   ;;  %v464_v42 = vpack.c.bf16 %v312_v36, %v311_v30  ;;  %v484_v43 = vpack.c.bf16 %v320_v37, %v319_v31  ;;  %v299_v44 = vadd.f32 %v428_v9, %v190_v40 }
  0xd2   :  { %v307_v45 = vadd.f32 %v428_v9, %v222_v41  ;;  %v526_v46 = vpop.f32.mrf.mxu0  ;;  %v534_v47 = vpop.f32.mrf.mxu1  ;;  %v317_v50 = vmax.f32 %v301_v38, 0.0  ;;  %v325_v51 = vmax.f32 %v309_v39, 0.0 }
  0xd3   :  { %465 = vst [vmem:[%s631_s3] sm:$0xff] %v464_v42   ;;  %504 = vst [vmem:[%s631_s3 + $0x20] sm:$0xff] %v484_v43   ;;  %v302_v48 = vadd.f32 %v526_v46, %v428_v9  ;;  %v310_v49 = vadd.f32 %v534_v47, %v428_v9  ;;  %v315_v58 = vmax.f32 %v299_v44, 0.0 }
  0xd4   :  { %v193_v52 = vpop.f32.mrf.mxu0  ;;  %v225_v53 = vpop.f32.mrf.mxu1  ;;  %v323_v59 = vmax.f32 %v307_v45, 0.0 }
  0xd5   :  { %v318_v54 = vmax.f32 %v302_v48, 0.0  ;;  %v326_v55 = vmax.f32 %v310_v49, 0.0  ;;  %v300_v56 = vadd.f32 %v428_v9, %v193_v52  ;;  %v308_v57 = vadd.f32 %v428_v9, %v225_v53 }
  0xd7   :  { %v479_v60 = vpack.c.bf16 %v318_v54, %v317_v50  ;;  %v499_v61 = vpack.c.bf16 %v326_v55, %v325_v51  ;;  %v316_v62 = vmax.f32 %v300_v56, 0.0  ;;  %v324_v63 = vmax.f32 %v308_v57, 0.0 }
  0xd9   :  { %503 = vst [vmem:[%s631_s3 + $0x18] sm:$0xff] %v479_v60   ;;  %507 = vst [vmem:[%s631_s3 + $0x38] sm:$0xff] %v499_v61   ;;  %v474_v0 = vpack.c.bf16 %v316_v62, %v315_v58  ;;  %v494_v1 = vpack.c.bf16 %v324_v63, %v323_v59 }
  0xdb   :  { %502 = vst [vmem:[%s631_s3 + $0x10] sm:$0xff] %v474_v0   ;;  %506 = vst [vmem:[%s631_s3 + $0x30] sm:$0xff] %v494_v1  }

// kernel: encoder_forward.4
= control target key start
LH: loop header
LB: loop body
LE: loop exit
PB: predicated region body
PF: predicated region fallthrough
CT: control target
= control target key end

     0   :  { %vm84_vm0 = vcmask 1043456   ;;  %vm77_vm1 = vcmask 588800   ;;  %s299_s1 = inlined_call_operand.vmem [shape: bf16[72,128], index: 1, kind: input, shape index: {}]   ;;  %s300_s0 = inlined_call_operand.vmem [shape: bf16[32,72], index: 0, kind: input, shape index: {}]   ;;  %s301_s2 = inlined_call_operand.vmem [shape: f32[1,128], index: 2, kind: input, shape index: {}]   ;;  %s302_s3 = inlined_call_operand.vmem [shape: bf16[32,128], index: 3, kind: output, shape index: {}]  }
   0x1   :  { %v242_v0 = vld [vmem:[%s299_s1 + $0x20] ss:$0 sps:$4 sm:$0xff]   ;;  %v243_v1 = vld [vmem:[%s299_s1 + $0x18] sm:$0xff]   ;;  %v244_v3 = vld [vmem:[%s299_s1 + $0x10] sm:$0xff]  }
   0x2   :  { %241 = vmatprep.subr.msk.bf16.mxu0 %vm84_vm0, %v242_v0  ;;  %v86_v2 = vsel %vm84_vm0, %v242_v0, 0  ;;  %v247_v4 = vld [vmem:[%s300_s0] sm:$0xff]   ;;  %v245_v5 = vld [vmem:[%s299_s1 + $0x8] sm:$0xff]  }
   0x3   :  { %228 = vmatpush3.bf16.msra.mxu0 %v86_v2  ;;  %237 = vmatprep.mubr.msk.bf16.mxu0 %vm77_vm1, %v247_v4  ;;  %v246_v6 = vld [vmem:[%s299_s1] sm:$0xff]   ;;  %v248_v7 = vld [vmem:[%s300_s0 + $0x8] sm:$0xff]  }
   0x4   :  { %229 = vmatprep.subr.bf16.mxu0 %v243_v1  ;;  %v200_v9 = vld [vmem:[%s301_s2] ss:$0 sm:$0xff] }
   0x7   :  { %230 = vmatpush3.bf16.msra.mxu0 %v243_v1 }
   0x8   :  { %231 = vmatprep.subr.bf16.mxu0 %v244_v3 }
   0xb   :  { %232 = vmatpush3.bf16.msra.mxu0 %v244_v3 }
   0xc   :  { %233 = vmatprep.subr.bf16.mxu0 %v245_v5 }
   0xf   :  { %234 = vmatpush3.bf16.msra.mxu0 %v245_v5 }
  0x10   :  { %235 = vmatprep.subr.bf16.mxu0 %v246_v6 }
  0x13   :  { %236 = vmatpush3.bf16.msra.mxu0 %v246_v6 }
  0x16   :  { %238 = vmatmul.mubr.msk.bf16.vlgmr.msra.gmra.mxu0 %vm77_vm1, %v248_v7 }
  0xd6   :  { %v239_v8 = vpop.f32.mrf.mxu0 }
  0xd7   :  { %v161_v11 = vadd.f32 %v239_v8, %v200_v9 }
  0xd8   :  { %v122_v10 = vpop.f32.mrf.mxu0 }
  0xd9   :  { %v159_v13 = vadd.f32 %v200_v9, %v122_v10  ;;  %v165_v16 = vmax.f32 %v161_v11, 0.0 }
  0xda   :  { %v240_v12 = vpop.f32.mrf.mxu0 }
  0xdb   :  { %v162_v14 = vadd.f32 %v240_v12, %v200_v9  ;;  %v163_v19 = vmax.f32 %v159_v13, 0.0 }
  0xdc   :  { %v125_v15 = vpop.f32.mrf.mxu0 }
  0xdd   :  { %v166_v17 = vmax.f32 %v162_v14, 0.0  ;;  %v160_v18 = vadd.f32 %v200_v9, %v125_v15 }
  0xdf   :  { %v217_v20 = vpack.c.bf16 %v166_v17, %v165_v16  ;;  %v164_v21 = vmax.f32 %v160_v18, 0.0 }
  0xe1   :  { %219 = vst [vmem:[%s302_s3 + $0x8] sm:$0xff] %v217_v20   ;;  %v212_v22 = vpack.c.bf16 %v164_v21, %v163_v19 }
  0xe3   :  { %213 = vst [vmem:[%s302_s3] sm:$0xff] %v212_v22  }

// kernel: encoder_forward.5
= control target key start
LH: loop header
LB: loop body
LE: loop exit
PB: predicated region body
PF: predicated region fallthrough
CT: control target
= control target key end

     0   :  { %s352_s1 = inlined_call_operand.vmem [shape: bf16[256,128], index: 1, kind: input, shape index: {}]   ;;  %s353_s0 = inlined_call_operand.vmem [shape: bf16[8,256], index: 0, kind: input, shape index: {}]   ;;  %s354_s2 = inlined_call_operand.vmem [shape: f32[1,128], index: 2, kind: input, shape index: {}]   ;;  %s355_s3 = inlined_call_operand.vmem [shape: f32[8,128], index: 3, kind: output, shape index: {}]  }
   0x1   :  { %v257_v0 = vld [vmem:[%s352_s1 + $0x78] sm:$0xff]   ;;  %v259_v2 = vld [vmem:[%s352_s1 + $0x70] sm:$0xff]   ;;  %v261_v4 = vld [vmem:[%s352_s1 + $0x68] sm:$0xff]  }
   0x2   :  { %v258_v1 = vld [vmem:[%s352_s1 + $0x38] sm:$0xff]   ;;  %235 = vmatprep.subr.bf16.mxu0 %v257_v0  ;;  %v260_v3 = vld [vmem:[%s352_s1 + $0x30] sm:$0xff]   ;;  %v262_v5 = vld [vmem:[%s352_s1 + $0x28] sm:$0xff]  }
   0x3   :  { %236 = vmatpush3.bf16.msra.mxu0 %v258_v1  ;;  %v263_v6 = vld [vmem:[%s352_s1 + $0x60] sm:$0xff]   ;;  %v265_v8 = vld [vmem:[%s352_s1 + $0x58] sm:$0xff]   ;;  %v267_v10 = vld [vmem:[%s352_s1 + $0x50] sm:$0xff]  }
   0x4   :  { %237 = vmatprep.subr.bf16.mxu0 %v259_v2  ;;  %v264_v7 = vld [vmem:[%s352_s1 + $0x20] sm:$0xff]   ;;  %v266_v9 = vld [vmem:[%s352_s1 + $0x18] sm:$0xff]   ;;  %v268_v13 = vld [vmem:[%s352_s1 + $0x10] sm:$0xff]  }
   0x5   :  { %v21_v11 = vld [vmem:[%s353_s0] sm:$0xff]  ;;  %v269_v14 = vld [vmem:[%s352_s1 + $0x48] sm:$0xff]  }
   0x6   :  { %v217_v12 = vcombine.high %v21_v11, %v21_v11  ;;  %v270_v15 = vld [vmem:[%s352_s1 + $0x8] sm:$0xff]   ;;  %v271_v16 = vld [vmem:[%s352_s1 + $0x40] sm:$0xff]   ;;  %v216_v18 = vcombine.low %v21_v11, %v21_v11 }
   0x7   :  { %238 = vmatpush3.bf16.msra.mxu0 %v260_v3  ;;  %v272_v17 = vld [vmem:[%s352_s1] sm:$0xff]  }
   0x8   :  { %239 = vmatprep.subr.bf16.mxu0 %v261_v4  ;;  %189 = vmatprep.mubr.bf16.mxu0 %v217_v12  ;;  %v234_v21 = vld [vmem:[%s354_s2] ss:$0 sm:$0xff] }
   0xb   :  { %240 = vmatpush3.bf16.msra.mxu0 %v262_v5 }
   0xc   :  { %241 = vmatprep.subr.bf16.mxu0 %v263_v6 }
   0xf   :  { %242 = vmatpush3.bf16.msra.mxu0 %v264_v7 }
  0x10   :  { %243 = vmatprep.subr.bf16.mxu0 %v265_v8 }
  0x13   :  { %244 = vmatpush3.bf16.msra.mxu0 %v266_v9 }
  0x14   :  { %245 = vmatprep.subr.bf16.mxu0 %v267_v10 }
  0x17   :  { %246 = vmatpush3.bf16.msra.mxu0 %v268_v13 }
  0x18   :  { %247 = vmatprep.subr.bf16.mxu0 %v269_v14 }
  0x1b   :  { %248 = vmatpush3.bf16.msra.mxu0 %v270_v15 }
  0x1c   :  { %249 = vmatprep.subr.bf16.mxu0 %v271_v16 }
  0x1f   :  { %250 = vmatpush3.bf16.msra.mxu0 %v272_v17 }
  0x22   :  { %190 = vmatmul.mubr.bf16.vlgmr.msra.gmra.mxu0 %v216_v18 }
  0xe2   :  { %v251_v19 = vpop.f32.mrf.mxu0 }
  0xe4   :  { %v252_v20 = vpop.f32.mrf.mxu0 }
  0xe5   :  { %v253_v22 = vadd.f32 %v252_v20, %v251_v19 }
  0xe6   :  { %v254_v23 = vpop.f32.mrf.mxu0 }
  0xe7   :  { %v210_v24 = vadd.f32 %v253_v22, %v234_v21 }
  0xe8   :  { %v255_v25 = vpop.f32.mrf.mxu0 }
  0xe9   :  { %211 = vst [vmem:[%s355_s3] sm:$0xff] %v210_v24 }

</bundles_post_ra>
